<compile_context>
chip_gen: v6e
topology: v6e:2x2x1
jax: 0.10.0
libtpu: 0.0.40
codegen_flags: <defaults>
</compile_context>

<pallas_src>
import functools

import jax
import jax.numpy as jnp
from jax.experimental import pallas as pl
from jax.experimental.pallas import tpu as pltpu


_VMEM = pl.BlockSpec(memory_space=pltpu.MemorySpace.VMEM)
_BN_EPS = 1e-5


# ----------------------------------------------------------------------------
# Fused forward kernel (whole network in one pallas_call)
# ----------------------------------------------------------------------------
def _make_fused_gcn_kernel(n_layers):
    n_gc, n_fcm, n_fc = n_layers[0], n_layers[1], n_layers[2]

    def kernel(*refs):
        # ---- unpack refs: (inputs..., out_ref) ---------------------------
        it = iter(refs)
        a_hat = next(it)[...]          # (N, N)  normalized adjacency
        pool = next(it)[...]           # (G, N)  global_add_pool as matmul
        x = next(it)[...]              # (N, F)  node features
        mol = next(it)[...]            # (G, M)  molecular features

        gc_w = []
        for _ in range(n_gc):
            w = next(it)[...]
            b = next(it)[...]
            gc_w.append((w, b))
        bn_gc_g = next(it)[...]
        bn_gc_b = next(it)[...]

        fcm_w = []
        for _ in range(n_fcm):
            w = next(it)[...]
            b = next(it)[...]
            fcm_w.append((w, b))
        bn_m_g = next(it)[...]
        bn_m_b = next(it)[...]

        fc_w = []
        for _ in range(n_fc):
            w = next(it)[...]
            b = next(it)[...]
            fc_w.append((w, b))

        o_ref = next(it)

        # ---- helpers (everything stays in VMEM / vregs) --------------------
        def dot(a, b):
            return jnp.dot(a, b, preferred_element_type=jnp.float32)

        def silu(y):
            return y * jax.nn.sigmoid(y)           # sigmoid -> EUP slot

        def batchnorm(y, gamma, beta):
            mean = jnp.mean(y, axis=0, keepdims=True)
            yc = y - mean                            # compute (x - mean) once
            var = jnp.mean(yc * yc, axis=0, keepdims=True)   # biased variance
            return yc * jax.lax.rsqrt(var + _BN_EPS) * gamma + beta

        # ---- graph branch: GCNConv_i = A_hat @ (H W_i) + b_i ---------------
        w0, b0 = gc_w[0]
        h = dot(a_hat, dot(x, w0)) + b0
        h = silu(batchnorm(h, bn_gc_g, bn_gc_b))
        for i in range(1, n_gc):
            w, b = gc_w[i]
            h = silu(dot(a_hat, dot(h, w)) + b)
        hg = dot(pool, h)                            # global_add_pool -> (G, d1)

        # ---- molecular-feature branch --------------------------------------
        wm0, bm0 = fcm_w[0]
        hm = silu(batchnorm(dot(mol, wm0) + bm0, bn_m_g, bn_m_b))
        for i in range(1, n_fcm):
            w, b = fcm_w[i]
            hm = silu(dot(hm, w) + b)

        # ---- head: cat([hg, hm]) @ W0  ==  hg @ W0_top + hm @ W0_bot --------
        wf0, bf0 = fc_w[0]
        d1 = hg.shape[1]
        z = silu(dot(hg, wf0[:d1, :]) + dot(hm, wf0[d1:, :]) + bf0)
        for i in range(1, n_fc - 1):
            w, b = fc_w[i]
            z = silu(dot(z, w) + b)
        w_last, b_last = fc_w[-1]
        o_ref[...] = dot(z, w_last) + b_last

    return kernel


# ----------------------------------------------------------------------------
# Plain-JAX glue: normalized adjacency and pooling matrix
#   (data-dependent scatter / one-hot construction stays outside Pallas)
# ----------------------------------------------------------------------------
def gcn_norm_adj(edge_index, num_nodes):
    """A_hat = D^-1/2 (A + I) D^-1/2 (PyG GCNConv normalization)."""
    src, dst = edge_index[0], edge_index[1]
    a = jnp.zeros((num_nodes, num_nodes), jnp.float32)
    a = a.at[dst, src].add(1.0)                       # aggregate src -> dst
    a = a + jnp.eye(num_nodes, dtype=jnp.float32)     # self loops
    deg = jnp.sum(a, axis=1)
    dinv = 1.0 / jnp.sqrt(deg)
    return dinv[:, None] * a * dinv[None, :]


def pooling_matrix(batch, num_graphs):
    """P[g, n] = 1 if node n belongs to graph g (global_add_pool as matmul)."""
    return jax.nn.one_hot(batch, num_graphs, dtype=jnp.float32).T


# ----------------------------------------------------------------------------
# Parameter construction (deterministic, matching the module's __init__ shapes)
# ----------------------------------------------------------------------------
def init_params(key, num_node_feats, n_mol_feats, dims, n_layers):
    def lin(key, fan_in, fan_out):
        kw, kb = jax.random.split(key)
        w = 0.1 * jax.random.normal(kw, (fan_in, fan_out), jnp.float32)
        b = 0.1 * jax.random.normal(kb, (fan_out,), jnp.float32)
        return w, b

    keys = iter(jax.random.split(key, 64))
    params = {}

    # gc: GCNConv(num_node_feats, dims[0]) ... GCNConv(dims[0], dims[1])
    gc = [lin(next(keys), num_node_feats, dims[0])]
    for _ in range(max(0, n_layers[0] - 2)):
        gc.append(lin(next(keys), dims[0], dims[0]))
    gc.append(lin(next(keys), dims[0], dims[1]))
    params["gc"] = gc
    params["bn_gc"] = (jnp.ones((dims[0],), jnp.float32),
                       jnp.zeros((dims[0],), jnp.float32))

    # fc_m
    fc_m = [lin(next(keys), n_mol_feats, dims[0])]
    for _ in range(max(0, n_layers[1] - 2)):
        fc_m.append(lin(next(keys), dims[0], dims[0]))
    fc_m.append(lin(next(keys), dims[0], dims[1]))
    params["fc_m"] = fc_m
    params["bn_m"] = (jnp.ones((dims[0],), jnp.float32),
                      jnp.zeros((dims[0],), jnp.float32))

    # fc head
    fc = [lin(next(keys), dims[1] * 2, dims[2])]
    for _ in range(max(0, n_layers[2] - 3)):
        fc.append(lin(next(keys), dims[2], dims[2]))
    fc.append(lin(next(keys), dims[2], dims[3]))
    fc.append(lin(next(keys), dims[3], dims[-1]))
    params["fc"] = fc
    return params


# ----------------------------------------------------------------------------
# Forward pass (mirrors GCN.forward) — ONE fused pallas_call
# ----------------------------------------------------------------------------
def gcn_forward(params, x, edge_index, batch, mol_feats, num_graphs, n_layers):
    n_nodes = x.shape[0]
    a_hat = gcn_norm_adj(edge_index, n_nodes)          # (N, N) glue
    pool = pooling_matrix(batch, num_graphs)           # (G, N) glue

    def row(v):
        return v.reshape(1, -1)

    flat_inputs = [a_hat, pool, x, mol_feats]
    for w, b in params["gc"]:
        flat_inputs += [w, row(b)]
    g, bt = params["bn_gc"]
    flat_inputs += [row(g), row(bt)]
    for w, b in params["fc_m"]:
        flat_inputs += [w, row(b)]
    g, bt = params["bn_m"]
    flat_inputs += [row(g), row(bt)]
    for w, b in params["fc"]:
        flat_inputs += [w, row(b)]

    out_dim = params["fc"][-1][0].shape[1]
    kernel = _make_fused_gcn_kernel(n_layers)

    return pl.pallas_call(
        kernel,
        out_shape=jax.ShapeDtypeStruct((num_graphs, out_dim), jnp.float32),
        in_specs=[_VMEM] * len(flat_inputs),
        out_specs=_VMEM,
    )(*flat_inputs)


# ----------------------------------------------------------------------------
if __name__ == "__main__":
    # small config consistent with the module
    num_node_feats = 16
    n_mol_feats = 8
    dims = (32, 32, 32, 16, 4)
    n_layers = (3, 3, 4)

    num_graphs = 2
    nodes_per_graph = 8
    n_nodes = num_graphs * nodes_per_graph

    key = jax.random.PRNGKey(0)
    k_x, k_m, k_p = jax.random.split(key, 3)

    # g.x
    x = jax.random.normal(k_x, (n_nodes, num_node_feats), jnp.float32)
    # g.mol_feats
    mol_feats = jax.random.normal(k_m, (num_graphs, n_mol_feats), jnp.float32)
    # g.batch
    batch = jnp.repeat(jnp.arange(num_graphs, dtype=jnp.int32), nodes_per_graph)
    # g.edge_index : bidirectional ring inside each graph
    src_list, dst_list = [], []
    for g in range(num_graphs):
        off = g * nodes_per_graph
        for i in range(nodes_per_graph):
            a, b = off + i, off + (i + 1) % nodes_per_graph
            src_list += [a, b]
            dst_list += [b, a]
    edge_index = jnp.array([src_list, dst_list], dtype=jnp.int32)  # (2, 32)

    params = init_params(k_p, num_node_feats, n_mol_feats, dims, n_layers)

    fwd = jax.jit(functools.partial(gcn_forward,
                                    num_graphs=num_graphs,
                                    n_layers=n_layers))
    out = fwd(params, x, edge_index, batch, mol_feats)
    out = jax.block_until_ready(out)
    assert out.shape == (num_graphs, dims[-1])
    assert bool(jnp.all(jnp.isfinite(out)))
    print("KERNEL_OK")
</pallas_src>

<mosaic_0001>
module attributes {stable_mosaic.version = 11 : i64} {
  func.func private @main(%arg0: i32) attributes {dimension_semantics = [#tpu.dimension_semantics<core_parallel>], iteration_bounds = array<i64: 2>, tpu.core_type = #tpu.core_type<sc_scalar_subcore>, window_params = []} {
    return
  }
}

module attributes {stable_mosaic.version = 11 : i64} {
  func.func private @main(%arg0: i32) attributes {dimension_semantics = [#tpu.dimension_semantics<core_parallel>], iteration_bounds = array<i64: 2>, tpu.core_type = #tpu.core_type<sc_scalar_subcore>, window_params = []} {
    return
  }
}

module attributes {stable_mosaic.version = 11 : i64} {
  func.func @kernel(%arg0: memref<16x16xf32, #tpu.memory_space<vmem>>, %arg1: memref<2x16xf32, #tpu.memory_space<vmem>>, %arg2: memref<16x16xf32, #tpu.memory_space<vmem>>, %arg3: memref<2x8xf32, #tpu.memory_space<vmem>>, %arg4: memref<16x32xf32, #tpu.memory_space<vmem>>, %arg5: memref<1x32xf32, #tpu.memory_space<vmem>>, %arg6: memref<32x32xf32, #tpu.memory_space<vmem>>, %arg7: memref<1x32xf32, #tpu.memory_space<vmem>>, %arg8: memref<32x32xf32, #tpu.memory_space<vmem>>, %arg9: memref<1x32xf32, #tpu.memory_space<vmem>>, %arg10: memref<1x32xf32, #tpu.memory_space<vmem>>, %arg11: memref<1x32xf32, #tpu.memory_space<vmem>>, %arg12: memref<8x32xf32, #tpu.memory_space<vmem>>, %arg13: memref<1x32xf32, #tpu.memory_space<vmem>>, %arg14: memref<32x32xf32, #tpu.memory_space<vmem>>, %arg15: memref<1x32xf32, #tpu.memory_space<vmem>>, %arg16: memref<32x32xf32, #tpu.memory_space<vmem>>, %arg17: memref<1x32xf32, #tpu.memory_space<vmem>>, %arg18: memref<1x32xf32, #tpu.memory_space<vmem>>, %arg19: memref<1x32xf32, #tpu.memory_space<vmem>>, %arg20: memref<64x32xf32, #tpu.memory_space<vmem>>, %arg21: memref<1x32xf32, #tpu.memory_space<vmem>>, %arg22: memref<32x32xf32, #tpu.memory_space<vmem>>, %arg23: memref<1x32xf32, #tpu.memory_space<vmem>>, %arg24: memref<32x16xf32, #tpu.memory_space<vmem>>, %arg25: memref<1x16xf32, #tpu.memory_space<vmem>>, %arg26: memref<16x4xf32, #tpu.memory_space<vmem>>, %arg27: memref<1x4xf32, #tpu.memory_space<vmem>>, %arg28: memref<2x4xf32, #tpu.memory_space<vmem>>) attributes {dimension_semantics = [], scalar_prefetch = 0 : i64, scratch_operands = 0 : i64, tpu.core_type = #tpu.core_type<tc>} {
    %c0 = arith.constant 0 : index
    %c0_0 = arith.constant 0 : index
    %0 = vector.load %arg0[%c0, %c0_0] : memref<16x16xf32, #tpu.memory_space<vmem>>, vector<16x16xf32>
    %c0_1 = arith.constant 0 : index
    %c0_2 = arith.constant 0 : index
    %1 = vector.load %arg1[%c0_1, %c0_2] : memref<2x16xf32, #tpu.memory_space<vmem>>, vector<2x16xf32>
    %c0_3 = arith.constant 0 : index
    %c0_4 = arith.constant 0 : index
    %2 = vector.load %arg2[%c0_3, %c0_4] : memref<16x16xf32, #tpu.memory_space<vmem>>, vector<16x16xf32>
    %c0_5 = arith.constant 0 : index
    %c0_6 = arith.constant 0 : index
    %3 = vector.load %arg3[%c0_5, %c0_6] : memref<2x8xf32, #tpu.memory_space<vmem>>, vector<2x8xf32>
    %c0_7 = arith.constant 0 : index
    %c0_8 = arith.constant 0 : index
    %4 = vector.load %arg4[%c0_7, %c0_8] : memref<16x32xf32, #tpu.memory_space<vmem>>, vector<16x32xf32>
    %c0_9 = arith.constant 0 : index
    %c0_10 = arith.constant 0 : index
    %5 = vector.load %arg5[%c0_9, %c0_10] : memref<1x32xf32, #tpu.memory_space<vmem>>, vector<1x32xf32>
    %c0_11 = arith.constant 0 : index
    %c0_12 = arith.constant 0 : index
    %6 = vector.load %arg6[%c0_11, %c0_12] : memref<32x32xf32, #tpu.memory_space<vmem>>, vector<32x32xf32>
    %c0_13 = arith.constant 0 : index
    %c0_14 = arith.constant 0 : index
    %7 = vector.load %arg7[%c0_13, %c0_14] : memref<1x32xf32, #tpu.memory_space<vmem>>, vector<1x32xf32>
    %c0_15 = arith.constant 0 : index
    %c0_16 = arith.constant 0 : index
    %8 = vector.load %arg8[%c0_15, %c0_16] : memref<32x32xf32, #tpu.memory_space<vmem>>, vector<32x32xf32>
    %c0_17 = arith.constant 0 : index
    %c0_18 = arith.constant 0 : index
    %9 = vector.load %arg9[%c0_17, %c0_18] : memref<1x32xf32, #tpu.memory_space<vmem>>, vector<1x32xf32>
    %c0_19 = arith.constant 0 : index
    %c0_20 = arith.constant 0 : index
    %10 = vector.load %arg10[%c0_19, %c0_20] : memref<1x32xf32, #tpu.memory_space<vmem>>, vector<1x32xf32>
    %c0_21 = arith.constant 0 : index
    %c0_22 = arith.constant 0 : index
    %11 = vector.load %arg11[%c0_21, %c0_22] : memref<1x32xf32, #tpu.memory_space<vmem>>, vector<1x32xf32>
    %c0_23 = arith.constant 0 : index
    %c0_24 = arith.constant 0 : index
    %12 = vector.load %arg12[%c0_23, %c0_24] : memref<8x32xf32, #tpu.memory_space<vmem>>, vector<8x32xf32>
    %c0_25 = arith.constant 0 : index
    %c0_26 = arith.constant 0 : index
    %13 = vector.load %arg13[%c0_25, %c0_26] : memref<1x32xf32, #tpu.memory_space<vmem>>, vector<1x32xf32>
    %c0_27 = arith.constant 0 : index
    %c0_28 = arith.constant 0 : index
    %14 = vector.load %arg14[%c0_27, %c0_28] : memref<32x32xf32, #tpu.memory_space<vmem>>, vector<32x32xf32>
    %c0_29 = arith.constant 0 : index
    %c0_30 = arith.constant 0 : index
    %15 = vector.load %arg15[%c0_29, %c0_30] : memref<1x32xf32, #tpu.memory_space<vmem>>, vector<1x32xf32>
    %c0_31 = arith.constant 0 : index
    %c0_32 = arith.constant 0 : index
    %16 = vector.load %arg16[%c0_31, %c0_32] : memref<32x32xf32, #tpu.memory_space<vmem>>, vector<32x32xf32>
    %c0_33 = arith.constant 0 : index
    %c0_34 = arith.constant 0 : index
    %17 = vector.load %arg17[%c0_33, %c0_34] : memref<1x32xf32, #tpu.memory_space<vmem>>, vector<1x32xf32>
    %c0_35 = arith.constant 0 : index
    %c0_36 = arith.constant 0 : index
    %18 = vector.load %arg18[%c0_35, %c0_36] : memref<1x32xf32, #tpu.memory_space<vmem>>, vector<1x32xf32>
    %c0_37 = arith.constant 0 : index
    %c0_38 = arith.constant 0 : index
    %19 = vector.load %arg19[%c0_37, %c0_38] : memref<1x32xf32, #tpu.memory_space<vmem>>, vector<1x32xf32>
    %c0_39 = arith.constant 0 : index
    %c0_40 = arith.constant 0 : index
    %20 = vector.load %arg20[%c0_39, %c0_40] : memref<64x32xf32, #tpu.memory_space<vmem>>, vector<64x32xf32>
    %c0_41 = arith.constant 0 : index
    %c0_42 = arith.constant 0 : index
    %21 = vector.load %arg21[%c0_41, %c0_42] : memref<1x32xf32, #tpu.memory_space<vmem>>, vector<1x32xf32>
    %c0_43 = arith.constant 0 : index
    %c0_44 = arith.constant 0 : index
    %22 = vector.load %arg22[%c0_43, %c0_44] : memref<32x32xf32, #tpu.memory_space<vmem>>, vector<32x32xf32>
    %c0_45 = arith.constant 0 : index
    %c0_46 = arith.constant 0 : index
    %23 = vector.load %arg23[%c0_45, %c0_46] : memref<1x32xf32, #tpu.memory_space<vmem>>, vector<1x32xf32>
    %c0_47 = arith.constant 0 : index
    %c0_48 = arith.constant 0 : index
    %24 = vector.load %arg24[%c0_47, %c0_48] : memref<32x16xf32, #tpu.memory_space<vmem>>, vector<32x16xf32>
    %c0_49 = arith.constant 0 : index
    %c0_50 = arith.constant 0 : index
    %25 = vector.load %arg25[%c0_49, %c0_50] : memref<1x16xf32, #tpu.memory_space<vmem>>, vector<1x16xf32>
    %c0_51 = arith.constant 0 : index
    %c0_52 = arith.constant 0 : index
    %26 = vector.load %arg26[%c0_51, %c0_52] : memref<16x4xf32, #tpu.memory_space<vmem>>, vector<16x4xf32>
    %c0_53 = arith.constant 0 : index
    %c0_54 = arith.constant 0 : index
    %27 = vector.load %arg27[%c0_53, %c0_54] : memref<1x4xf32, #tpu.memory_space<vmem>>, vector<1x4xf32>
    %cst = arith.constant dense<0.000000e+00> : vector<16x32xf32>
    %28 = tpu.matmul %2, %4, %cst {dimension_numbers = #tpu.dot_dimension_numbers<[1], [0], [0], [1], [0, 0, 1, 1], [], []>} : vector<16x16xf32>, vector<16x32xf32>, vector<16x32xf32> -> vector<16x32xf32>
    %cst_55 = arith.constant dense<0.000000e+00> : vector<16x32xf32>
    %29 = tpu.matmul %0, %28, %cst_55 {dimension_numbers = #tpu.dot_dimension_numbers<[1], [0], [0], [1], [0, 0, 1, 1], [], []>} : vector<16x16xf32>, vector<16x32xf32>, vector<16x32xf32> -> vector<16x32xf32>
    %30 = vector.broadcast %5 : vector<1x32xf32> to vector<16x32xf32>
    %31 = arith.addf %29, %30 : vector<16x32xf32>
    %cst_56 = arith.constant dense<0.000000e+00> : vector<32xf32>
    %32 = vector.multi_reduction <add>, %31, %cst_56 [0] : vector<16x32xf32> to vector<32xf32>
    %33 = vector.shape_cast %32 : vector<32xf32> to vector<1x32xf32>
    %cst_57 = arith.constant 1.600000e+01 : f32
    %34 = vector.broadcast %cst_57 : f32 to vector<1x32xf32>
    %35 = arith.divf %33, %34 : vector<1x32xf32>
    %36 = vector.broadcast %35 : vector<1x32xf32> to vector<16x32xf32>
    %37 = arith.subf %31, %36 : vector<16x32xf32>
    %38 = arith.mulf %37, %37 : vector<16x32xf32>
    %cst_58 = arith.constant dense<0.000000e+00> : vector<32xf32>
    %39 = vector.multi_reduction <add>, %38, %cst_58 [0] : vector<16x32xf32> to vector<32xf32>
    %40 = vector.shape_cast %39 : vector<32xf32> to vector<1x32xf32>
    %cst_59 = arith.constant 1.600000e+01 : f32
    %41 = vector.broadcast %cst_59 : f32 to vector<1x32xf32>
    %42 = arith.divf %40, %41 : vector<1x32xf32>
    %cst_60 = arith.constant 9.99999974E-6 : f32
    %43 = vector.broadcast %cst_60 : f32 to vector<1x32xf32>
    %44 = arith.addf %42, %43 : vector<1x32xf32>
    %45 = math.rsqrt %44 : vector<1x32xf32>
    %46 = vector.broadcast %45 : vector<1x32xf32> to vector<16x32xf32>
    %47 = arith.mulf %37, %46 : vector<16x32xf32>
    %48 = vector.broadcast %10 : vector<1x32xf32> to vector<16x32xf32>
    %49 = arith.mulf %47, %48 : vector<16x32xf32>
    %50 = vector.broadcast %11 : vector<1x32xf32> to vector<16x32xf32>
    %51 = arith.addf %49, %50 : vector<16x32xf32>
    %52 = arith.negf %51 : vector<16x32xf32>
    %53 = math.exp %52 : vector<16x32xf32>
    %cst_61 = arith.constant 1.000000e+00 : f32
    %54 = vector.broadcast %cst_61 : f32 to vector<16x32xf32>
    %55 = arith.addf %54, %53 : vector<16x32xf32>
    %56 = arith.divf %54, %55 : vector<16x32xf32>
    %57 = arith.mulf %51, %56 : vector<16x32xf32>
    %cst_62 = arith.constant dense<0.000000e+00> : vector<16x32xf32>
    %58 = tpu.matmul %57, %6, %cst_62 {dimension_numbers = #tpu.dot_dimension_numbers<[1], [0], [0], [1], [0, 0, 1, 1], [], []>} : vector<16x32xf32>, vector<32x32xf32>, vector<16x32xf32> -> vector<16x32xf32>
    %cst_63 = arith.constant dense<0.000000e+00> : vector<16x32xf32>
    %59 = tpu.matmul %0, %58, %cst_63 {dimension_numbers = #tpu.dot_dimension_numbers<[1], [0], [0], [1], [0, 0, 1, 1], [], []>} : vector<16x16xf32>, vector<16x32xf32>, vector<16x32xf32> -> vector<16x32xf32>
    %60 = vector.broadcast %7 : vector<1x32xf32> to vector<16x32xf32>
    %61 = arith.addf %59, %60 : vector<16x32xf32>
    %62 = arith.negf %61 : vector<16x32xf32>
    %63 = math.exp %62 : vector<16x32xf32>
    %cst_64 = arith.constant 1.000000e+00 : f32
    %64 = vector.broadcast %cst_64 : f32 to vector<16x32xf32>
    %65 = arith.addf %64, %63 : vector<16x32xf32>
    %66 = arith.divf %64, %65 : vector<16x32xf32>
    %67 = arith.mulf %61, %66 : vector<16x32xf32>
    %cst_65 = arith.constant dense<0.000000e+00> : vector<16x32xf32>
    %68 = tpu.matmul %67, %8, %cst_65 {dimension_numbers = #tpu.dot_dimension_numbers<[1], [0], [0], [1], [0, 0, 1, 1], [], []>} : vector<16x32xf32>, vector<32x32xf32>, vector<16x32xf32> -> vector<16x32xf32>
    %cst_66 = arith.constant dense<0.000000e+00> : vector<16x32xf32>
    %69 = tpu.matmul %0, %68, %cst_66 {dimension_numbers = #tpu.dot_dimension_numbers<[1], [0], [0], [1], [0, 0, 1, 1], [], []>} : vector<16x16xf32>, vector<16x32xf32>, vector<16x32xf32> -> vector<16x32xf32>
    %70 = vector.broadcast %9 : vector<1x32xf32> to vector<16x32xf32>
    %71 = arith.addf %69, %70 : vector<16x32xf32>
    %72 = arith.negf %71 : vector<16x32xf32>
    %73 = math.exp %72 : vector<16x32xf32>
    %cst_67 = arith.constant 1.000000e+00 : f32
    %74 = vector.broadcast %cst_67 : f32 to vector<16x32xf32>
    %75 = arith.addf %74, %73 : vector<16x32xf32>
    %76 = arith.divf %74, %75 : vector<16x32xf32>
    %77 = arith.mulf %71, %76 : vector<16x32xf32>
    %cst_68 = arith.constant dense<0.000000e+00> : vector<2x32xf32>
    %78 = tpu.matmul %1, %77, %cst_68 {dimension_numbers = #tpu.dot_dimension_numbers<[1], [0], [0], [1], [0, 0, 1, 1], [], []>} : vector<2x16xf32>, vector<16x32xf32>, vector<2x32xf32> -> vector<2x32xf32>
    %cst_69 = arith.constant dense<0.000000e+00> : vector<2x32xf32>
    %79 = tpu.matmul %3, %12, %cst_69 {dimension_numbers = #tpu.dot_dimension_numbers<[1], [0], [0], [1], [0, 0, 1, 1], [], []>} : vector<2x8xf32>, vector<8x32xf32>, vector<2x32xf32> -> vector<2x32xf32>
    %80 = vector.broadcast %13 : vector<1x32xf32> to vector<2x32xf32>
    %81 = arith.addf %79, %80 : vector<2x32xf32>
    %cst_70 = arith.constant dense<0.000000e+00> : vector<32xf32>
    %82 = vector.multi_reduction <add>, %81, %cst_70 [0] : vector<2x32xf32> to vector<32xf32>
    %83 = vector.shape_cast %82 : vector<32xf32> to vector<1x32xf32>
    %cst_71 = arith.constant 2.000000e+00 : f32
    %84 = vector.broadcast %cst_71 : f32 to vector<1x32xf32>
    %85 = arith.divf %83, %84 : vector<1x32xf32>
    %86 = vector.broadcast %85 : vector<1x32xf32> to vector<2x32xf32>
    %87 = arith.subf %81, %86 : vector<2x32xf32>
    %88 = arith.mulf %87, %87 : vector<2x32xf32>
    %cst_72 = arith.constant dense<0.000000e+00> : vector<32xf32>
    %89 = vector.multi_reduction <add>, %88, %cst_72 [0] : vector<2x32xf32> to vector<32xf32>
    %90 = vector.shape_cast %89 : vector<32xf32> to vector<1x32xf32>
    %cst_73 = arith.constant 2.000000e+00 : f32
    %91 = vector.broadcast %cst_73 : f32 to vector<1x32xf32>
    %92 = arith.divf %90, %91 : vector<1x32xf32>
    %cst_74 = arith.constant 9.99999974E-6 : f32
    %93 = vector.broadcast %cst_74 : f32 to vector<1x32xf32>
    %94 = arith.addf %92, %93 : vector<1x32xf32>
    %95 = math.rsqrt %94 : vector<1x32xf32>
    %96 = vector.broadcast %95 : vector<1x32xf32> to vector<2x32xf32>
    %97 = arith.mulf %87, %96 : vector<2x32xf32>
    %98 = vector.broadcast %18 : vector<1x32xf32> to vector<2x32xf32>
    %99 = arith.mulf %97, %98 : vector<2x32xf32>
    %100 = vector.broadcast %19 : vector<1x32xf32> to vector<2x32xf32>
    %101 = arith.addf %99, %100 : vector<2x32xf32>
    %102 = arith.negf %101 : vector<2x32xf32>
    %103 = math.exp %102 : vector<2x32xf32>
    %cst_75 = arith.constant 1.000000e+00 : f32
    %104 = vector.broadcast %cst_75 : f32 to vector<2x32xf32>
    %105 = arith.addf %104, %103 : vector<2x32xf32>
    %106 = arith.divf %104, %105 : vector<2x32xf32>
    %107 = arith.mulf %101, %106 : vector<2x32xf32>
    %cst_76 = arith.constant dense<0.000000e+00> : vector<2x32xf32>
    %108 = tpu.matmul %107, %14, %cst_76 {dimension_numbers = #tpu.dot_dimension_numbers<[1], [0], [0], [1], [0, 0, 1, 1], [], []>} : vector<2x32xf32>, vector<32x32xf32>, vector<2x32xf32> -> vector<2x32xf32>
    %109 = vector.broadcast %15 : vector<1x32xf32> to vector<2x32xf32>
    %110 = arith.addf %108, %109 : vector<2x32xf32>
    %111 = arith.negf %110 : vector<2x32xf32>
    %112 = math.exp %111 : vector<2x32xf32>
    %cst_77 = arith.constant 1.000000e+00 : f32
    %113 = vector.broadcast %cst_77 : f32 to vector<2x32xf32>
    %114 = arith.addf %113, %112 : vector<2x32xf32>
    %115 = arith.divf %113, %114 : vector<2x32xf32>
    %116 = arith.mulf %110, %115 : vector<2x32xf32>
    %cst_78 = arith.constant dense<0.000000e+00> : vector<2x32xf32>
    %117 = tpu.matmul %116, %16, %cst_78 {dimension_numbers = #tpu.dot_dimension_numbers<[1], [0], [0], [1], [0, 0, 1, 1], [], []>} : vector<2x32xf32>, vector<32x32xf32>, vector<2x32xf32> -> vector<2x32xf32>
    %118 = vector.broadcast %17 : vector<1x32xf32> to vector<2x32xf32>
    %119 = arith.addf %117, %118 : vector<2x32xf32>
    %120 = arith.negf %119 : vector<2x32xf32>
    %121 = math.exp %120 : vector<2x32xf32>
    %cst_79 = arith.constant 1.000000e+00 : f32
    %122 = vector.broadcast %cst_79 : f32 to vector<2x32xf32>
    %123 = arith.addf %122, %121 : vector<2x32xf32>
    %124 = arith.divf %122, %123 : vector<2x32xf32>
    %125 = arith.mulf %119, %124 : vector<2x32xf32>
    %126 = vector.extract_strided_slice %20 {offsets = [0, 0], sizes = [32, 32], strides = [1, 1]} : vector<64x32xf32> to vector<32x32xf32>
    %cst_80 = arith.constant dense<0.000000e+00> : vector<2x32xf32>
    %127 = tpu.matmul %78, %126, %cst_80 {dimension_numbers = #tpu.dot_dimension_numbers<[1], [0], [0], [1], [0, 0, 1, 1], [], []>} : vector<2x32xf32>, vector<32x32xf32>, vector<2x32xf32> -> vector<2x32xf32>
    %128 = vector.extract_strided_slice %20 {offsets = [32, 0], sizes = [32, 32], strides = [1, 1]} : vector<64x32xf32> to vector<32x32xf32>
    %cst_81 = arith.constant dense<0.000000e+00> : vector<2x32xf32>
    %129 = tpu.matmul %125, %128, %cst_81 {dimension_numbers = #tpu.dot_dimension_numbers<[1], [0], [0], [1], [0, 0, 1, 1], [], []>} : vector<2x32xf32>, vector<32x32xf32>, vector<2x32xf32> -> vector<2x32xf32>
    %130 = arith.addf %127, %129 : vector<2x32xf32>
    %131 = vector.broadcast %21 : vector<1x32xf32> to vector<2x32xf32>
    %132 = arith.addf %130, %131 : vector<2x32xf32>
    %133 = arith.negf %132 : vector<2x32xf32>
    %134 = math.exp %133 : vector<2x32xf32>
    %cst_82 = arith.constant 1.000000e+00 : f32
    %135 = vector.broadcast %cst_82 : f32 to vector<2x32xf32>
    %136 = arith.addf %135, %134 : vector<2x32xf32>
    %137 = arith.divf %135, %136 : vector<2x32xf32>
    %138 = arith.mulf %132, %137 : vector<2x32xf32>
    %cst_83 = arith.constant dense<0.000000e+00> : vector<2x32xf32>
    %139 = tpu.matmul %138, %22, %cst_83 {dimension_numbers = #tpu.dot_dimension_numbers<[1], [0], [0], [1], [0, 0, 1, 1], [], []>} : vector<2x32xf32>, vector<32x32xf32>, vector<2x32xf32> -> vector<2x32xf32>
    %140 = vector.broadcast %23 : vector<1x32xf32> to vector<2x32xf32>
    %141 = arith.addf %139, %140 : vector<2x32xf32>
    %142 = arith.negf %141 : vector<2x32xf32>
    %143 = math.exp %142 : vector<2x32xf32>
    %cst_84 = arith.constant 1.000000e+00 : f32
    %144 = vector.broadcast %cst_84 : f32 to vector<2x32xf32>
    %145 = arith.addf %144, %143 : vector<2x32xf32>
    %146 = arith.divf %144, %145 : vector<2x32xf32>
    %147 = arith.mulf %141, %146 : vector<2x32xf32>
    %cst_85 = arith.constant dense<0.000000e+00> : vector<2x16xf32>
    %148 = tpu.matmul %147, %24, %cst_85 {dimension_numbers = #tpu.dot_dimension_numbers<[1], [0], [0], [1], [0, 0, 1, 1], [], []>} : vector<2x32xf32>, vector<32x16xf32>, vector<2x16xf32> -> vector<2x16xf32>
    %149 = vector.broadcast %25 : vector<1x16xf32> to vector<2x16xf32>
    %150 = arith.addf %148, %149 : vector<2x16xf32>
    %151 = arith.negf %150 : vector<2x16xf32>
    %152 = math.exp %151 : vector<2x16xf32>
    %cst_86 = arith.constant 1.000000e+00 : f32
    %153 = vector.broadcast %cst_86 : f32 to vector<2x16xf32>
    %154 = arith.addf %153, %152 : vector<2x16xf32>
    %155 = arith.divf %153, %154 : vector<2x16xf32>
    %156 = arith.mulf %150, %155 : vector<2x16xf32>
    %cst_87 = arith.constant dense<0.000000e+00> : vector<2x4xf32>
    %157 = tpu.matmul %156, %26, %cst_87 {dimension_numbers = #tpu.dot_dimension_numbers<[1], [0], [0], [1], [0, 0, 1, 1], [], []>} : vector<2x16xf32>, vector<16x4xf32>, vector<2x4xf32> -> vector<2x4xf32>
    %158 = vector.broadcast %27 : vector<1x4xf32> to vector<2x4xf32>
    %159 = arith.addf %157, %158 : vector<2x4xf32>
    %c0_88 = arith.constant 0 : index
    %c0_89 = arith.constant 0 : index
    %160 = vector.load %arg28[%c0_88, %c0_89] : memref<2x4xf32, #tpu.memory_space<vmem>>, vector<2x4xf32>
    tpu.vector_store %arg28[%c0_88, %c0_89], %159 {strides = array<i32>} : memref<2x4xf32, #tpu.memory_space<vmem>>, vector<2x4xf32>,
    return
  }
}

</mosaic_0001>

<bundles_post_ra>
// kernel: gcn_forward.1
= control target key start
LH: loop header
LB: loop body
LE: loop exit
PB: predicated region body
PF: predicated region fallthrough
CT: control target
= control target key end

     0   :  { %s2252_s0 = inlined_call_operand.vmem [shape: f32[16,16], index: 0, kind: input, shape index: {}]   ;;  %s2253_s1 = inlined_call_operand.vmem [shape: f32[2,16], index: 1, kind: input, shape index: {}]   ;;  %s2254_s2 = inlined_call_operand.vmem [shape: f32[16,16], index: 2, kind: input, shape index: {}]   ;;  %s2255_s3 = inlined_call_operand.vmem [shape: f32[2,8], index: 3, kind: input, shape index: {}]   ;;  %s2256_s4 = inlined_call_operand.vmem [shape: f32[16,32], index: 4, kind: input, shape index: {}]   ;;  %s2257_s5 = inlined_call_operand.vmem [shape: f32[1,32], index: 5, kind: input, shape index: {}]   ;;  %s2258_s6 = inlined_call_operand.vmem [shape: f32[32,32], index: 6, kind: input, shape index: {}]   ;;  %s2259_s7 = inlined_call_operand.vmem [shape: f32[1,32], index: 7, kind: input, shape index: {}]   ;;  %s2260_s8 = inlined_call_operand.vmem [shape: f32[32,32], index: 8, kind: input, shape index: {}]   ;;  %s2261_s9 = inlined_call_operand.vmem [shape: f32[1,32], index: 9, kind: input, shape index: {}]   ;;  %s2262_s10 = inlined_call_operand.vmem [shape: f32[1,32], index: 10, kind: input, shape index: {}]   ;;  %s2263_s11 = inlined_call_operand.vmem [shape: f32[1,32], index: 11, kind: input, shape index: {}]   ;;  %s2264_s12 = inlined_call_operand.vmem [shape: f32[8,32], index: 12, kind: input, shape index: {}]   ;;  %s2265_s13 = inlined_call_operand.vmem [shape: f32[1,32], index: 13, kind: input, shape index: {}]   ;;  %s2266_s14 = inlined_call_operand.vmem [shape: f32[32,32], index: 14, kind: input, shape index: {}]   ;;  %s2267_s15 = inlined_call_operand.vmem [shape: f32[1,32], index: 15, kind: input, shape index: {}]   ;;  %s2268_s16 = inlined_call_operand.vmem [shape: f32[32,32], index: 16, kind: input, shape index: {}]   ;;  %s2269_s17 = inlined_call_operand.vmem [shape: f32[1,32], index: 17, kind: input, shape index: {}]   ;;  %s2270_s18 = inlined_call_operand.vmem [shape: f32[1,32], index: 18, kind: input, shape index: {}]   ;;  %s2271_s19 = inlined_call_operand.vmem [shape: f32[1,32], index: 19, kind: input, shape index: {}]   ;;  %s2272_s20 = inlined_call_operand.vmem [shape: f32[64,32], index: 20, kind: input, shape index: {}]   ;;  %s2273_s21 = inlined_call_operand.vmem [shape: f32[1,32], index: 21, kind: input, shape index: {}]   ;;  %s2274_s22 = inlined_call_operand.vmem [shape: f32[32,32], index: 22, kind: input, shape index: {}]   ;;  %s2275_s23 = inlined_call_operand.vmem [shape: f32[1,32], index: 23, kind: input, shape index: {}]   ;;  %s2276_s24 = inlined_call_operand.vmem [shape: f32[32,16], index: 24, kind: input, shape index: {}]   ;;  %s2277_s25 = inlined_call_operand.vmem [shape: f32[1,16], index: 25, kind: input, shape index: {}]   ;;  %s2278_s26 = inlined_call_operand.vmem [shape: f32[16,4], index: 26, kind: input, shape index: {}]   ;;  %s2279_s27 = inlined_call_operand.vmem [shape: f32[1,4], index: 27, kind: input, shape index: {}]   ;;  %s2280_s28 = inlined_call_operand.hbm [shape: f32[2,4], index: 28, kind: output, shape index: {}]  }
   0x1   :  { %2286 = sst [smem:[#allocation5_spill]] %s2252_s0 }
   0x2   :  { %2287 = sst [smem:[#allocation6_spill]] %s2253_s1 }
   0x3   :  { %2288 = sst [smem:[#allocation7_spill]] %s2254_s2 }
   0x4   :  { %2289 = sst [smem:[#allocation8_spill]] %s2255_s3 }
   0x5   :  { %2290 = sst [smem:[#allocation9_spill]] %s2256_s4 }
   0x6   :  { %2291 = sst [smem:[#allocation10_spill]] %s2257_s5 }
   0x7   :  { %2292 = sst [smem:[#allocation11_spill]] %s2258_s6 }
   0x8   :  { %2293 = sst [smem:[#allocation12_spill]] %s2259_s7 }
   0x9   :  { %2294 = sst [smem:[#allocation13_spill]] %s2260_s8 }
   0xa   :  { %2295 = sst [smem:[#allocation14_spill]] %s2261_s9 }
   0xb   :  { %2296 = sst [smem:[#allocation15_spill]] %s2262_s10 }
   0xc   :  { %2297 = sst [smem:[#allocation16_spill]] %s2263_s11 }
   0xd   :  { %2298 = sst [smem:[#allocation17_spill]] %s2264_s12 }
   0xe   :  { %s2299_s9 = sld [smem:[#allocation9_spill]]  ;;  %vm147_vm0 = vcmask 130048  }
   0xf   :  { %s2300_s0 = sld [smem:[#allocation7_spill]] }
  0x14   :  { %v97_v0 = vld [vmem:[%s2299_s9 + $0x8] sm:$0xff]  ;;  %v96_v1 = vld [vmem:[%s2299_s9] sm:$0xff] }
  0x15   :  { %v93_v2 = vld [vmem:[%s2300_s0] sm:$0xff]  ;;  %1637 = vmatprep.subr.mxu0 %v97_v0 }
  0x16   :  { %1641 = vmatprep.mubr.msk.f32.mxu0 %vm147_vm0, %v93_v2 }
  0x17   :  { %33 = vsyncpa [#allocation3], 0  ;;  %1638 = vmatpush3.msra.mxu0 %v97_v0  ;;  %v94_v3 = vld [vmem:[%s2300_s0 + $0x8] sm:$0xff]  ;;  %s2301_s12 = sld [smem:[#allocation5_spill]]  ;;  %vm316_vm1 = vcmask 261120   ;;  %vm1850_vm2 = vmmov 0  }
  0x18   :  { %1639 = vmatprep.subr.mxu0 %v96_v1  ;;  %s2302_s9 = sld [smem:[#allocation11_spill]]  ;;  %vm807_vm3 = vcmask 64512   ;;  %vm881_vm4 = vcmask 254976   ;;  %vm1508_vm5 = vcmask 25600  }
  0x19   :  { %1640 = vmatpush3.msra.mxu0 %v96_v1  ;;  %s2303_s7 = sld [smem:[#allocation10_spill]] }
  0x1a   :  { %1642 = vmatmul.mubr.msk.f32.vlgmr.msra.gmra.mxu0 %vm147_vm0, %v94_v3  ;;  %s2304_s4 = sld [smem:[#allocation15_spill]]  ;;  %v1849_v3 = vmov 0.0  }
  0x1b   :  { %s2306_s6 = sld [smem:[#allocation13_spill]] }
  0x1d   :  { %v2014_v4 = vld [vmem:[%s2301_s12] sm:$0xff]  ;;  %v2021_v7 = vld [vmem:[%s2301_s12 + $0x8] sm:$0xff] }
  0x1e   :  { %1648 = vmatprep.mubr.msk.f32.mxu1 %vm147_vm0, %v2014_v4  ;;  %v102_v8 = vld [vmem:[%s2302_s9 + $0x18] sm:$0xff]  ;;  %v101_v9 = vld [vmem:[%s2302_s9 + $0x10] sm:$0xff]  ;;  %v100_v10 = vld [vmem:[%s2302_s9 + $0x8] sm:$0xff] }
  0x1f   :  { %1651 = vmatprep.subr.mxu0 %v102_v8  ;;  %v99_v11 = vld [vmem:[%s2302_s9] sm:$0xff]  ;;  %s2305_s9 = sld [smem:[#allocation16_spill]] }
  0x20   :  { %1652 = vmatpush3.msra.mxu0 %v102_v8  ;;  %v1526_v12 = vld [vmem:[%s2303_s7] ss:$0 sm:$0xff]  ;;  %s2310_s7 = sld [smem:[#allocation14_spill]] }
  0x21   :  { %1653 = vmatprep.subr.mxu0 %v101_v9  ;;  %v1529_v43 = vld [vmem:[%s2304_s4] ss:$0 sm:$0xff]  ;;  %v107_v63 = vld [vmem:[%s2306_s6 + $0x18] sm:$0xff]  ;;  %v106_v0 = vld [vmem:[%s2306_s6 + $0x10] sm:$0xff]  ;;  %s2307_s4 = sld [smem:[#allocation12_spill]] }
  0x22   :  { %1654 = vmatpush3.msra.mxu0 %v101_v9  ;;  %v105_v1 = vld [vmem:[%s2306_s6 + $0x8] sm:$0xff]  ;;  %v104_v2 = vld [vmem:[%s2306_s6] sm:$0xff]  ;;  %s2309_s6 = sld [smem:[#allocation8_spill]] }
  0x23   :  { %1655 = vmatprep.subr.mxu0 %v100_v10 }
  0x24   :  { %1656 = vmatpush3.msra.mxu0 %v100_v10 }
  0x25   :  { %1657 = vmatprep.subr.mxu0 %v99_v11  ;;  %v1530_v46 = vld [vmem:[%s2305_s9] ss:$0 sm:$0xff]  ;;  %s2308_s9 = sld [smem:[#allocation17_spill]] }
  0x26   :  { %1658 = vmatpush3.msra.mxu0 %v99_v11 }
  0xda   :  { %v1643_v5 = vpop.f32.mrf.mxu0 }
  0xdb   :  { %1644 = vmatprep.subr.mxu1 %v1643_v5 }
  0xdc   :  { %v220_v6 = vpop.f32.mrf.mxu0  ;;  %1645 = vmatpush3.msra.mxu1 %v1643_v5 }
  0xdd   :  { %1646 = vmatprep.subr.mxu1 %v220_v6 }
  0xde   :  { %1647 = vmatpush3.msra.mxu1 %v220_v6 }
  0xdf   :  { %1649 = vmatmul.mubr.msk.f32.vlgmr.msra.gmra.mxu1 %vm147_vm0, %v2021_v7 }
  0xe0   :  { %1666 = vmatprep.mubr.msk.f32.mxu1 %vm147_vm0, %v2014_v4 }
 0x19f   :  { %v1650_v13 = vpop.f32.mrf.mxu1 }
 0x1a0   :  { %v313_v14 = vadd.f32 %v1650_v13, %v1526_v12 }
 0x1a1   :  { %v307_v15 = vpop.f32.mrf.mxu1 }
 0x1a2   :  { %v308_v16 = vadd.f32 %v1526_v12, %v307_v15  ;;  %v318_v17 = vsel %vm316_vm1, %v313_v14, 0.0 }
 0x1a4   :  { %v317_v18 = vsel %vm316_vm1, %v308_v16, 0.0 }
 0x1a5   :  { %v319_v19 = vadd.f32 %v318_v17, %v317_v18 }
 0x1a7   :  { %v320_v20 = vrot.slane %v319_v19, 4 }
 0x1a9   :  { %v321_v21 = vadd.f32 %v320_v20, %v319_v19  ;;  %v111_v20 = vld [vmem:[%s2308_s9] sm:$0xff] }
 0x1ab   :  { %v322_v22 = vrot.slane %v321_v21, 2 }
 0x1ad   :  { %v323_v23 = vadd.f32 %v322_v22, %v321_v21  ;;  %v95_v21 = vld [vmem:[%s2309_s6] sm:$0x3] }
 0x1af   :  { %v324_v24 = vrot.slane %v323_v23, 1 }
 0x1b1   :  { %v325_v25 = vadd.f32 %v324_v24, %v323_v23 }
 0x1b3   :  { %v327_v26 = vmul.f32 0.0625, %v325_v25 }
 0x1b5   :  { %v328_v27 = vsub.f32 %v308_v16, %v327_v26  ;;  %v329_v28 = vsub.f32 %v313_v14, %v327_v26  ;;  %v1548_v26 = vld [vmem:[%s2265_s13] ss:$0 sm:$0xff] }
 0x1b7   :  { %v330_v29 = vmul.f32 %v328_v27, %v328_v27  ;;  %v331_v30 = vmul.f32 %v329_v28, %v329_v28 }
 0x1b9   :  { %v332_v31 = vsel %vm316_vm1, %v330_v29, 0.0  ;;  %v333_v32 = vsel %vm316_vm1, %v331_v30, 0.0 }
 0x1ba   :  { %v334_v33 = vadd.f32 %v333_v32, %v332_v31 }
 0x1bc   :  { %v335_v34 = vrot.slane %v334_v33, 4 }
 0x1be   :  { %v336_v35 = vadd.f32 %v335_v34, %v334_v33 }
 0x1c0   :  { %v337_v36 = vrot.slane %v336_v35, 2 }
 0x1c2   :  { %v338_v37 = vadd.f32 %v337_v36, %v336_v35 }
 0x1c4   :  { %v339_v38 = vrot.slane %v338_v37, 1 }
 0x1c6   :  { %v340_v39 = vadd.f32 %v339_v38, %v338_v37 }
 0x1c8   :  { %v341_v40 = vmul.f32 0.0625, %v340_v39 }
 0x1ca   :  { %v342_v41 = vadd.f32 1e-05, %v341_v40 }
 0x1cc   :  { %1775 = vrsqrt.f32 %v342_v41 }
 0x1d9   :  { %v1776_v42 = vpop.eup %1775 }
 0x1da   :  { %v344_v44 = vmul.f32 %v1776_v42, %v328_v27  ;;  %v345_v45 = vmul.f32 %v1776_v42, %v329_v28 }
 0x1dc   :  { %v352_v47 = vmul.f32 %v1529_v43, %v344_v44  ;;  %v353_v48 = vmul.f32 %v1529_v43, %v345_v45 }
 0x1de   :  { %v360_v49 = vadd.f32 %v1530_v46, %v352_v47  ;;  %v361_v50 = vadd.f32 %v1530_v46, %v353_v48  ;;  %v1550_v48 = vld [vmem:[%s2270_s18] ss:$0 sm:$0xff] }
 0x1e0   :  { %v1531_v51 = vmul.f32 -1.442695, %v360_v49  ;;  %v1532_v52 = vmul.f32 -1.442695, %v361_v50 }
 0x1e2   :  { %1777 = vpow2.f32 %v1531_v51  ;;  %v1551_v51 = vld [vmem:[%s2271_s19] ss:$0 sm:$0xff] }
 0x1e3   :  { %1779 = vpow2.f32 %v1532_v52 }
 0x1ef   :  { %v1778_v53 = vpop.eup %1777 }
 0x1f0   :  { %v1780_v54 = vpop.eup %1779  ;;  %v368_v55 = vadd.f32 1.0, %v1778_v53 }
 0x1f1   :  { %v369_v56 = vadd.f32 1.0, %v1780_v54 }
 0x1f2   :  { %1781 = vrcp.f32 %v368_v55 }
 0x1f3   :  { %1783 = vrcp.f32 %v369_v56 }
 0x1ff   :  { %v1782_v57 = vpop.eup %1781 }
 0x200   :  { %v1784_v58 = vpop.eup %1783  ;;  %v374_v59 = vmul.f32 %v1782_v57, %v360_v49 }
 0x201   :  { %v375_v60 = vmul.f32 %v1784_v58, %v361_v50  ;;  %v1542_v50 = vld [vmem:[%s2310_s7] ss:$0 sm:$0xff] }
 0x202   :  { %1659 = vmatprep.mubr.msk.f32.mxu0 %vm316_vm1, %v374_v59 }
 0x203   :  { %1660 = vmatmul.mubr.msk.f32.vlgmr.msra.gmra.mxu0 %vm316_vm1, %v375_v60 }
 0x204   :  { %1684 = vmatprep.mubr.msk.f32.mxu0 %vm147_vm0, %v2014_v4  ;;  %v1535_v4 = vld [vmem:[%s2307_s4] ss:$0 sm:$0xff]  ;;  %s2311_s4 = sld [smem:[#allocation6_spill]] }
 0x2c3   :  { %v1661_v61 = vpop.f32.mrf.mxu0 }
 0x2c4   :  { %1662 = vmatprep.subr.mxu1 %v1661_v61 }
 0x2c5   :  { %v448_v62 = vpop.f32.mrf.mxu0  ;;  %1663 = vmatpush3.msra.mxu1 %v1661_v61 }
 0x2c6   :  { %1664 = vmatprep.subr.mxu1 %v448_v62 }
 0x2c7   :  { %1665 = vmatpush3.msra.mxu1 %v448_v62 }
 0x2c8   :  { %1667 = vmatmul.mubr.msk.f32.vlgmr.msra.gmra.mxu1 %vm147_vm0, %v2021_v7  ;;  %1669 = vmatprep.subr.mxu1 %v107_v63 }
 0x2c9   :  { %1670 = vmatpush3.msra.mxu1 %v107_v63 }
 0x2ca   :  { %1671 = vmatprep.subr.mxu1 %v106_v0 }
 0x2cb   :  { %1672 = vmatpush3.msra.mxu1 %v106_v0 }
 0x2cc   :  { %1673 = vmatprep.subr.mxu1 %v105_v1 }
 0x2cd   :  { %1674 = vmatpush3.msra.mxu1 %v105_v1 }
 0x2ce   :  { %1675 = vmatprep.subr.mxu1 %v104_v2 }
 0x2cf   :  { %1676 = vmatpush3.msra.mxu1 %v104_v2 }
 0x2d0   :  { %1694 = vmatprep.subr.mxu1 %v1849_v3 }
 0x388   :  { %v1668_v5 = vpop.f32.mrf.mxu1 }
 0x389   :  { %v535_v6 = vadd.f32 %v1668_v5, %v1535_v4 }
 0x38a   :  { %v529_v8 = vpop.f32.mrf.mxu1 }
 0x38b   :  { %v1539_v9 = vmul.f32 -1.442695, %v535_v6  ;;  %v530_v10 = vadd.f32 %v1535_v4, %v529_v8  ;;  %v92_v8 = vld [vmem:[%s2311_s4] sm:$0x3] }
 0x38d   :  { %1785 = vpow2.f32 %v1539_v9  ;;  %v1538_v11 = vmul.f32 -1.442695, %v530_v10  ;;  %v116_v9 = vld [vmem:[%s2266_s14 + $0x18] sm:$0xff] }
 0x38f   :  { %1787 = vpow2.f32 %v1538_v11  ;;  %v114_v11 = vld [vmem:[%s2266_s14 + $0x8] sm:$0xff] }
 0x39a   :  { %v1786_v12 = vpop.eup %1785 }
 0x39b   :  { %v545_v13 = vadd.f32 1.0, %v1786_v12 }
 0x39c   :  { %v1788_v14 = vpop.eup %1787 }
 0x39d   :  { %v544_v15 = vadd.f32 1.0, %v1788_v14  ;;  %1789 = vrcp.f32 %v545_v13  ;;  %v113_v13 = vld [vmem:[%s2266_s14] sm:$0xff] }
 0x39f   :  { %1791 = vrcp.f32 %v544_v15  ;;  %v121_v15 = vld [vmem:[%s2268_s16 + $0x18] sm:$0xff] }
 0x3aa   :  { %v1790_v16 = vpop.eup %1789 }
 0x3ab   :  { %v551_v19 = vmul.f32 %v1790_v16, %v535_v6  ;;  %v120_v16 = vld [vmem:[%s2268_s16 + $0x10] sm:$0xff] }
 0x3ac   :  { %v1792_v17 = vpop.eup %1791 }
 0x3ad   :  { %v550_v18 = vmul.f32 %v1792_v17, %v530_v10  ;;  %v115_v10 = vld [vmem:[%s2266_s14 + $0x10] sm:$0xff]  ;;  %v119_v17 = vld [vmem:[%s2268_s16 + $0x8] sm:$0xff] }
 0x3af   :  { %1677 = vmatprep.mubr.msk.f32.mxu1 %vm316_vm1, %v550_v18  ;;  %v118_v18 = vld [vmem:[%s2268_s16] sm:$0xff] }
 0x3b0   :  { %1678 = vmatmul.mubr.msk.f32.vlgmr.msra.gmra.mxu1 %vm316_vm1, %v551_v19 }
 0x3b1   :  { %1695 = vmatpush3.msra.mxu1 %v111_v20  ;;  %1696 = vmatprep.mubr.msk.f32.mxu1 %vm1850_vm2, %v1849_v3 }
 0x3b2   :  { %1710 = vmatprep.subr.mxu1 %v1849_v3 }
 0x3b4   :  { %1697 = vmatmul.mubr.msk.f32.vlgmr.msra.gmra.mxu1 %vm807_vm3, %v95_v21  ;;  %v1553_v21 = vld [vmem:[%s2267_s15] ss:$0 sm:$0xff] }
 0x3b5   :  { %1718 = vmatprep.mubr.msk.f32.mxu1 %vm1850_vm2, %v1849_v3  ;;  %1711 = vmatpush3.msra.mxu1 %v121_v15  ;;  %v1566_v15 = vld [vmem:[%s2277_s25] ss:$0 sm:$0xff] }
 0x3b6   :  { %1712 = vmatprep.subr.mxu1 %v1849_v3 }
 0x3b7   :  { %1713 = vmatpush3.msra.mxu1 %v120_v16 }
 0x3b8   :  { %1714 = vmatprep.subr.mxu1 %v1849_v3 }
 0x3b9   :  { %1715 = vmatpush3.msra.mxu1 %v119_v17 }
 0x3ba   :  { %1716 = vmatprep.subr.mxu1 %v1849_v3 }
 0x3bb   :  { %1717 = vmatpush3.msra.mxu1 %v118_v18 }
 0x3bc   :  { %1732 = vmatprep.subr.mxu1 %v1849_v3 }
 0x470   :  { %v1679_v22 = vpop.f32.mrf.mxu1 }
 0x471   :  { %1680 = vmatprep.subr.mxu0 %v1679_v22 }
 0x472   :  { %v624_v23 = vpop.f32.mrf.mxu1  ;;  %1681 = vmatpush3.msra.mxu0 %v1679_v22 }
 0x473   :  { %1682 = vmatprep.subr.mxu0 %v624_v23 }
 0x474   :  { %1683 = vmatpush3.msra.mxu0 %v624_v23  ;;  %v877_v24 = vpop.f32.mrf.mxu1 }
 0x475   :  { %1685 = vmatmul.mubr.msk.f32.vlgmr.msra.gmra.mxu0 %vm147_vm0, %v2021_v7  ;;  %1687 = vmatprep.subr.mxu0 %v1849_v3  ;;  %v878_v27 = vadd.f32 %v1548_v26, %v877_v24 }
 0x476   :  { %v1698_v25 = vpop.f32.mrf.mxu1  ;;  %1691 = vmatprep.mubr.msk.f32.mxu0 %vm1850_vm2, %v1849_v3 }
 0x477   :  { %v882_v28 = vsel %vm881_vm4, %v878_v27, 0.0 }
 0x478   :  { %v883_v29 = vrot.slane %v882_v28, 4 }
 0x47a   :  { %v884_v30 = vadd.f32 %v883_v29, %v882_v28 }
 0x47c   :  { %v885_v31 = vrot.slane %v884_v30, 2 }
 0x47e   :  { %v886_v32 = vadd.f32 %v885_v31, %v884_v30  ;;  %v128_v30 = vld [vmem:[%s2272_s20 + $0x18] sm:$0xff]  ;;  %v127_v31 = vld [vmem:[%s2272_s20 + $0x10] sm:$0xff] }
 0x480   :  { %v887_v33 = vrot.slane %v886_v32, 1 }
 0x482   :  { %v888_v34 = vadd.f32 %v887_v33, %v886_v32  ;;  %v126_v32 = vld [vmem:[%s2272_s20 + $0x8] sm:$0xff]  ;;  %v125_v33 = vld [vmem:[%s2272_s20] sm:$0xff] }
 0x484   :  { %v890_v7 = vmul.f32 0.5, %v888_v34  ;;  %v132_v34 = vld [vmem:[%s2272_s20 + $0x38] sm:$0xff] }
 0x486   :  { %v891_v35 = vsub.f32 %v878_v27, %v890_v7  ;;  %v131_v7 = vld [vmem:[%s2272_s20 + $0x30] sm:$0xff] }
 0x488   :  { %v892_v36 = vmul.f32 %v891_v35, %v891_v35 }
 0x48a   :  { %v893_v37 = vsel %vm881_vm4, %v892_v36, 0.0  ;;  %v129_v36 = vld [vmem:[%s2272_s20 + $0x20] sm:$0xff] }
 0x48b   :  { %v894_v38 = vrot.slane %v893_v37, 4 }
 0x48d   :  { %v895_v39 = vadd.f32 %v894_v38, %v893_v37  ;;  %v1556_v37 = vld [vmem:[%s2269_s17] ss:$0 sm:$0xff] }
 0x48f   :  { %v896_v40 = vrot.slane %v895_v39, 2 }
 0x491   :  { %v897_v41 = vadd.f32 %v896_v40, %v895_v39 }
 0x493   :  { %v898_v42 = vrot.slane %v897_v41, 1 }
 0x495   :  { %v899_v43 = vadd.f32 %v898_v42, %v897_v41 }
 0x497   :  { %v900_v44 = vmul.f32 0.5, %v899_v43 }
 0x499   :  { %v901_v45 = vadd.f32 1e-05, %v900_v44 }
 0x49b   :  { %1793 = vrsqrt.f32 %v901_v45 }
 0x4a8   :  { %v1794_v46 = vpop.eup %1793 }
 0x4a9   :  { %v903_v47 = vmul.f32 %v1794_v46, %v891_v35  ;;  %v130_v35 = vld [vmem:[%s2272_s20 + $0x28] sm:$0xff]  ;;  %s1851_s20 = smov [#allocation2]  }
 0x4aa   :  { %s1516_s1 = sshll.u32 %s1851_s20, 4  ;;  %s1517_s1 = int_to_ptr.vmem [resolvable:$true] %s1516_s1 }
 0x4ab   :  { %v910_v49 = vmul.f32 %v1550_v48, %v903_v47  ;;  %v137_v48 = vld [vmem:[%s2274_s22 + $0x18] sm:$0xff]  ;;  %s1827_s25 = scalar_lea.vmem %s1517_s1, 32  ;;  %p1832_p1 = scmp.lt.s32.totalorder %s1517_s1, %s1517_s1 }
 0x4ac   :  { %p1828_p0 = scmp.ne.s32.totalorder %s1517_s1, %s1827_s25  ;;  %p1833_p2 = scmp.lt.s32.totalorder %s1827_s25, %s1827_s25 }
 0x4ad   :  { %v917_v54 = vadd.f32 %v1551_v51, %v910_v49  ;;  %v136_v49 = vld [vmem:[%s2274_s22 + $0x10] sm:$0xff]  ;;  %v134_v51 = vld [vmem:[%s2274_s22] sm:$0xff] }
 0x4ae   :  { %p1834_p3 = por %p1833_p2, %p1832_p1 }
 0x4af   :  { %v1552_v59 = vmul.f32 -1.442695, %v917_v54 }
 0x4b0   :  { %p1835_p4 = pnand %p1834_p3, %p1828_p0 }
 0x535   :  { %v1686_v52 = vpop.f32.mrf.mxu0 }
 0x536   :  { %v711_v53 = vadd.f32 %v1686_v52, %v1542_v50  ;;  %v1561_v52 = vld [vmem:[%s2273_s21] ss:$0 sm:$0xff] }
 0x537   :  { %v705_v55 = vpop.f32.mrf.mxu0 }
 0x538   :  { %v1546_v56 = vmul.f32 -1.442695, %v711_v53  ;;  %v706_v57 = vadd.f32 %v1542_v50, %v705_v55  ;;  %v135_v50 = vld [vmem:[%s2274_s22 + $0x8] sm:$0xff] }
 0x53a   :  { %1795 = vpow2.f32 %v1546_v56  ;;  %v1545_v58 = vmul.f32 -1.442695, %v706_v57 }
 0x53c   :  { %1797 = vpow2.f32 %v1545_v58 }
 0x53d   :  { %1799 = vpow2.f32 %v1552_v59 }
 0x547   :  { %v1796_v60 = vpop.eup %1795 }
 0x548   :  { %v721_v61 = vadd.f32 1.0, %v1796_v60 }
 0x549   :  { %v1798_v62 = vpop.eup %1797 }
 0x54a   :  { %1801 = vrcp.f32 %v721_v61  ;;  %v720_v63 = vadd.f32 1.0, %v1798_v62  ;;  %v1800_v0 = vpop.eup %1799  ;;  %v142_v62 = vld [vmem:[%s2276_s24 + $0x18] sm:$0xff] }
 0x54b   :  { %v921_v1 = vadd.f32 1.0, %v1800_v0  ;;  %v140_v0 = vld [vmem:[%s2276_s24 + $0x8] sm:$0xff] }
 0x54c   :  { %1803 = vrcp.f32 %v720_v63  ;;  %v141_v63 = vld [vmem:[%s2276_s24 + $0x10] sm:$0xff] }
 0x54d   :  { %1805 = vrcp.f32 %v921_v1  ;;  %v139_v1 = vld [vmem:[%s2276_s24] sm:$0xff] }
 0x557   :  { %v1802_v2 = vpop.eup %1801 }
 0x558   :  { %v727_v4 = vmul.f32 %v1802_v2, %v711_v53  ;;  %v1563_v2 = vld [vmem:[%s2275_s23] ss:$0 sm:$0xff] }
 0x559   :  { %v1804_v5 = vpop.eup %1803 }
 0x55a   :  { %v726_v6 = vmul.f32 %v1804_v5, %v706_v57  ;;  %1688 = vmatpush3.msra.mxu0 %v727_v4  ;;  %v1806_v12 = vpop.eup %1805 }
 0x55b   :  { %1689 = vmatprep.subr.mxu0 %v1849_v3  ;;  %v924_v14 = vmul.f32 %v1806_v12, %v917_v54 }
 0x55c   :  { %1690 = vmatpush3.msra.mxu0 %v726_v6 }
 0x55d   :  { %1692 = vmatmul.mubr.msk.f32.vlgmr.msra.gmra.mxu0 %vm147_vm0, %v92_v8  ;;  %1699 = vmatprep.subr.mxu0 %v1849_v3 }
 0x55e   :  { %1700 = vmatpush3.msra.mxu0 %v116_v9  ;;  %1707 = vmatprep.mubr.msk.f32.mxu0 %vm1850_vm2, %v1849_v3 }
 0x55f   :  { %1701 = vmatprep.subr.mxu0 %v1849_v3 }
 0x560   :  { %1702 = vmatpush3.msra.mxu0 %v115_v10 }
 0x561   :  { %1703 = vmatprep.subr.mxu0 %v1849_v3 }
 0x562   :  { %1704 = vmatpush3.msra.mxu0 %v114_v11 }
 0x563   :  { %1705 = vmatprep.subr.mxu0 %v1849_v3 }
 0x564   :  { %1706 = vmatpush3.msra.mxu0 %v113_v13  ;;  %v145_v13 = vld [vmem:[%s2278_s26 + $0x8] sm:$0xff] }
 0x565   :  { %1708 = vmatmul.mubr.msk.f32.vlgmr.msra.gmra.mxu0 %vm316_vm1, %v924_v14  ;;  %1721 = vmatprep.subr.mxu0 %v1849_v3  ;;  %v144_v14 = vld [vmem:[%s2278_s26] sm:$0xff] }
 0x566   :  { %1729 = vmatprep.mubr.msk.f32.mxu0 %vm1850_vm2, %v1849_v3  ;;  %1722 = vmatpush3.msra.mxu0 %v132_v34 }
 0x567   :  { %1723 = vmatprep.subr.mxu0 %v1849_v3 }
 0x568   :  { %1724 = vmatpush3.msra.mxu0 %v131_v7 }
 0x569   :  { %1725 = vmatprep.subr.mxu0 %v1849_v3 }
 0x56a   :  { %1726 = vmatpush3.msra.mxu0 %v130_v35 }
 0x56b   :  { %1727 = vmatprep.subr.mxu0 %v1849_v3 }
 0x56c   :  { %1728 = vmatpush3.msra.mxu0 %v129_v36 }
 0x56d   :  { %1743 = vmatprep.subr.mxu0 %v1849_v3 }
 0x61d   :  { %v797_v19 = vpop.f32.mrf.mxu0 }
 0x61f   :  { %v1693_v20 = vpop.f32.mrf.mxu0 }
 0x625   :  { %v1000_v22 = vpop.f32.mrf.mxu0 }
 0x626   :  { %v1001_v23 = vadd.f32 %v1553_v21, %v1000_v22 }
 0x627   :  { %v1709_v24 = vpop.f32.mrf.mxu0 }
 0x628   :  { %v1555_v25 = vmul.f32 -1.442695, %v1001_v23 }
 0x62a   :  { %1807 = vpow2.f32 %v1555_v25 }
 0x637   :  { %v1808_v26 = vpop.eup %1807 }
 0x638   :  { %v1007_v27 = vadd.f32 1.0, %v1808_v26 }
 0x63a   :  { %1809 = vrcp.f32 %v1007_v27 }
 0x647   :  { %v1810_v28 = vpop.eup %1809 }
 0x648   :  { %v1010_v29 = vmul.f32 %v1810_v28, %v1001_v23 }
 0x64a   :  { %1719 = vmatmul.mubr.msk.f32.vlgmr.msra.gmra.mxu1 %vm316_vm1, %v1010_v29 }
 0x64b   :  { %1733 = vmatpush3.msra.mxu1 %v128_v30  ;;  %1740 = vmatprep.mubr.msk.f32.mxu1 %vm1850_vm2, %v1849_v3 }
 0x64c   :  { %1734 = vmatprep.subr.mxu1 %v1849_v3 }
 0x64d   :  { %1735 = vmatpush3.msra.mxu1 %v127_v31 }
 0x64e   :  { %1736 = vmatprep.subr.mxu1 %v1849_v3 }
 0x64f   :  { %1737 = vmatpush3.msra.mxu1 %v126_v32 }
 0x650   :  { %1738 = vmatprep.subr.mxu1 %v1849_v3 }
 0x651   :  { %1739 = vmatpush3.msra.mxu1 %v125_v33 }
 0x652   :  { %1741 = vmatmul.mubr.msk.f32.vlgmr.msra.gmra.mxu1 %vm316_vm1, %v797_v19  ;;  %1754 = vmatprep.subr.mxu1 %v1849_v3 }
 0x653   :  { %1762 = vmatprep.mubr.msk.f32.mxu1 %vm1850_vm2, %v1849_v3  ;;  %1755 = vmatpush3.msra.mxu1 %v142_v62 }
 0x654   :  { %1756 = vmatprep.subr.mxu1 %v1849_v3 }
 0x655   :  { %1757 = vmatpush3.msra.mxu1 %v141_v63 }
 0x656   :  { %1758 = vmatprep.subr.mxu1 %v1849_v3 }
 0x657   :  { %1759 = vmatpush3.msra.mxu1 %v140_v0 }
 0x658   :  { %1760 = vmatprep.subr.mxu1 %v1849_v3 }
 0x659   :  { %1761 = vmatpush3.msra.mxu1 %v139_v1 }
 0x70a   :  { %v1086_v38 = vpop.f32.mrf.mxu1 }
 0x70b   :  { %v1087_v39 = vadd.f32 %v1556_v37, %v1086_v38 }
 0x70c   :  { %v1720_v40 = vpop.f32.mrf.mxu1 }
 0x70d   :  { %v1558_v41 = vmul.f32 -1.442695, %v1087_v39 }
 0x70f   :  { %1811 = vpow2.f32 %v1558_v41 }
 0x712   :  { %v1239_v42 = vpop.f32.mrf.mxu1 }
 0x714   :  { %v1742_v43 = vpop.f32.mrf.mxu1 }
 0x71c   :  { %v1812_v44 = vpop.eup %1811 }
 0x71d   :  { %v1093_v45 = vadd.f32 1.0, %v1812_v44 }
 0x71f   :  { %1813 = vrcp.f32 %v1093_v45 }
 0x72c   :  { %v1814_v46 = vpop.eup %1813 }
 0x72d   :  { %v1096_v47 = vmul.f32 %v1814_v46, %v1087_v39 }
 0x72f   :  { %1730 = vmatmul.mubr.msk.f32.vlgmr.msra.gmra.mxu0 %vm316_vm1, %v1096_v47 }
 0x730   :  { %1751 = vmatprep.mubr.msk.f32.mxu0 %vm1850_vm2, %v1849_v3  ;;  %1744 = vmatpush3.msra.mxu0 %v137_v48 }
 0x731   :  { %1745 = vmatprep.subr.mxu0 %v1849_v3 }
 0x732   :  { %1746 = vmatpush3.msra.mxu0 %v136_v49 }
 0x733   :  { %1747 = vmatprep.subr.mxu0 %v1849_v3 }
 0x734   :  { %1748 = vmatpush3.msra.mxu0 %v135_v50 }
 0x735   :  { %1749 = vmatprep.subr.mxu0 %v1849_v3 }
 0x736   :  { %1750 = vmatpush3.msra.mxu0 %v134_v51 }
 0x737   :  { %1765 = vmatprep.subr.mxu0 %v1849_v3 }
 0x7ef   :  { %v1166_v53 = vpop.f32.mrf.mxu0 }
 0x7f0   :  { %v1240_v54 = vadd.f32 %v1239_v42, %v1166_v53 }
 0x7f1   :  { %v1731_v55 = vpop.f32.mrf.mxu0 }
 0x7f2   :  { %v1249_v56 = vadd.f32 %v1561_v52, %v1240_v54 }
 0x7f4   :  { %v1562_v57 = vmul.f32 -1.442695, %v1249_v56 }
 0x7f6   :  { %1815 = vpow2.f32 %v1562_v57 }
 0x803   :  { %v1816_v58 = vpop.eup %1815 }
 0x804   :  { %v1253_v59 = vadd.f32 1.0, %v1816_v58 }
 0x806   :  { %1817 = vrcp.f32 %v1253_v59 }
 0x813   :  { %v1818_v60 = vpop.eup %1817 }
 0x814   :  { %v1256_v61 = vmul.f32 %v1818_v60, %v1249_v56 }
 0x816   :  { %1752 = vmatmul.mubr.msk.f32.vlgmr.msra.gmra.mxu0 %vm316_vm1, %v1256_v61 }
 0x817   :  { %1769 = vmatprep.mubr.msk.f32.mxu0 %vm1850_vm2, %v1849_v3  ;;  %1766 = vmatpush3.msra.mxu0 %v145_v13 }
 0x818   :  { %1767 = vmatprep.subr.mxu0 %v1849_v3  ;;  %v1569_v3 = vld [vmem:[%s2279_s27] ss:$0 sm:$0xff] }
 0x819   :  { %1768 = vmatpush3.msra.mxu0 %v144_v14 }
 0x8d6   :  { %v1332_v4 = vpop.f32.mrf.mxu0 }
 0x8d7   :  { %v1333_v5 = vadd.f32 %v1563_v2, %v1332_v4 }
 0x8d8   :  { %v1753_v6 = vpop.f32.mrf.mxu0 }
 0x8d9   :  { %v1565_v8 = vmul.f32 -1.442695, %v1333_v5 }
 0x8db   :  { %1819 = vpow2.f32 %v1565_v8 }
 0x8e8   :  { %v1820_v9 = vpop.eup %1819 }
 0x8e9   :  { %v1339_v10 = vadd.f32 1.0, %v1820_v9 }
 0x8eb   :  { %1821 = vrcp.f32 %v1339_v10 }
 0x8f8   :  { %v1822_v11 = vpop.eup %1821 }
 0x8f9   :  { %v1342_v12 = vmul.f32 %v1822_v11, %v1333_v5 }
 0x8fb   :  { %1763 = vmatmul.mubr.msk.f32.vlgmr.msra.gmra.mxu1 %vm316_vm1, %v1342_v12 }
 0x9bb   :  { %v1418_v16 = vpop.f32.mrf.mxu1 }
 0x9bc   :  { %v1419_v17 = vadd.f32 %v1566_v15, %v1418_v16 }
 0x9bd   :  { %v1764_v18 = vpop.f32.mrf.mxu1 }
 0x9be   :  { %v1568_v19 = vmul.f32 -1.442695, %v1419_v17 }
 0x9c0   :  { %1823 = vpow2.f32 %v1568_v19 }
 0x9cd   :  { %v1824_v20 = vpop.eup %1823 }
 0x9ce   :  { %v1425_v21 = vadd.f32 1.0, %v1824_v20 }
 0x9d0   :  { %1825 = vrcp.f32 %v1425_v21 }
 0x9dd   :  { %v1826_v22 = vpop.eup %1825 }
 0x9de   :  { %v1428_v23 = vmul.f32 %v1826_v22, %v1419_v17 }
 0x9e0   :  { %1770 = vmatmul.mubr.msk.f32.vlgmr.msra.gmra.mxu0 %vm147_vm0, %v1428_v23 }
 0xaa0   :  { %v1504_v24 = vpop.f32.mrf.mxu0 }
 0xaa1   :  { %v1505_v25 = vadd.f32 %v1569_v3, %v1504_v24 }
 0xaa2   :  { %v1771_v26 = vpop.f32.mrf.mxu0 }
 0xaa3   :  { %1509 = vst.msk [vmem:[#allocation2] sm:$0x3] %vm1508_vm5, %v1505_v25 }
 0xaa4   :  { %1838 = shalt.err (!%p1835_p4)
}
 0xaa5   :  { %1519 = dma.vmem_to_hbm [thread:$0]  %s1517_s1, 32, %s2280_s28, [#allocation3]  }
 0xaa6   :  { %1847 = dma.done.wait [#allocation3], 32  }
 0xaa7   :  { %1848 = vsyncadd [#allocation3], 4294967264 }
 0xaa8   :  { %1523 = vsyncpa [#allocation3], 1 }

</bundles_post_ra>
